<compile_context>
chip_gen: v5e
topology: v5e:2x2
jax: 0.10.0
libtpu: 0.0.40
codegen_flags: <defaults>
</compile_context>

<pallas_src>
import functools

import jax
import jax.numpy as jnp
from jax.experimental import pallas as pl
from jax.experimental.pallas import tpu as pltpu

_LANE = 128          # last dim of every block must be a multiple of the 128-lane vreg
_SUBLANE_BF16 = 16   # bf16 sublane-pack granule for the row tile


def _round_up(x: int, m: int) -> int:
    return ((x + m - 1) // m) * m


# ---------------------------------------------------------------------------
# One-time weight preparation (do at parameter init, NOT per forward call)
# ---------------------------------------------------------------------------
def prepare_ffn_weights(w1, w2, *, compute_dtype=jnp.bfloat16):
    """Cast FFN weights to the MXU compute dtype and pad both dims to the 128-lane
    granule.  Zero padding is inert: padded d_ff columns give h == 0 -> act(0) == 0
    -> zero contribution; padded d_model output columns are sliced off."""
    d_model, d_ff = w1.shape
    assert w2.shape == (d_ff, d_model), (w1.shape, w2.shape)
    D = _round_up(d_model, _LANE)
    F = _round_up(d_ff, _LANE)
    if (D, F) != (d_model, d_ff):
        w1 = jnp.pad(w1, ((0, D - d_model), (0, F - d_ff)))
        w2 = jnp.pad(w2, ((0, F - d_ff), (0, D - d_model)))
    return w1.astype(compute_dtype), w2.astype(compute_dtype)


# ---------------------------------------------------------------------------
# Tile sizing / VMEM budgeting
# ---------------------------------------------------------------------------
def _vmem_budget_bytes() -> int:
    cap = 64 << 20                       # conservative fallback == v7x physical VMEM/TC
    try:
        cap = int(getattr(pltpu.get_tpu_info(), "vmem_capacity_bytes", cap))
    except Exception:
        pass
    return (cap * 3) // 4                # headroom for compiler-internal scratch


def _tile_vmem_bytes(tm: int, tf: int, D: int, cbytes: int, obytes: int) -> int:
    return (2 * tm * D * cbytes          # x tile, double-buffered
            + 2 * D * tf * cbytes        # W1 tile, double-buffered
            + 2 * tf * D * cbytes        # W2 tile, double-buffered
            + 2 * tm * D * obytes        # output tile, double-buffered
            + tm * D * 4                 # f32 accumulator scratch
            + tm * tf * 4)               # f32 `h` intermediate inside the body


def _pick_tf(F: int, block_f: int) -> int:
    """Largest multiple of 128 that divides F and is <= block_f (at least 128)."""
    best, t = 128, 128
    while t <= min(block_f, F):
        if F % t == 0:
            best = t
        t += 128
    return min(best, F)


# ---------------------------------------------------------------------------
# Kernel: one (row-tile, d_ff-tile) step of  act(x @ W1) @ W2
# ---------------------------------------------------------------------------
def ffn_kernel(x_ref, w1_ref, w2_ref, o_ref, acc_ref, *, non_linearity):
    f = pl.program_id(1)
    nf = pl.num_programs(1)

    @pl.when(f == 0)
    def _():
        acc_ref[...] = jnp.zeros_like(acc_ref)

    # First matmul contracts the FULL d_model axis -> activation exact per tile.
    h = jnp.dot(x_ref[...], w1_ref[...], preferred_element_type=jnp.float32)
    if non_linearity == "relu":
        h = jnp.maximum(h, 0.0)
    elif non_linearity == "gelu":
        h = jax.nn.gelu(h, approximate=False)   # torch.nn.GELU default is exact erf
    else:  # "leaky"
        h = jnp.where(h > 0, h, 0.01 * h)       # torch.nn.LeakyReLU default slope

    # Second matmul contracts this d_ff tile; accumulate in f32 across grid steps.
    partial = jnp.dot(h.astype(w2_ref.dtype), w2_ref[...],
                      preferred_element_type=jnp.float32)

    is_last = f == nf - 1

    @pl.when(jnp.logical_not(is_last))
    def _():
        acc_ref[...] += partial

    # Fuse the final accumulate into the output store: saves one (tm, d_model)
    # f32 store+reload per row tile and relieves the store port on the epilogue.
    @pl.when(is_last)
    def _():
        o_ref[...] = (acc_ref[...] + partial).astype(o_ref.dtype)


# ---------------------------------------------------------------------------
# Wrapper
# ---------------------------------------------------------------------------
def ffn_forward(x, w1, w2, *, non_linearity="relu", block_m=1024, block_f=256,
                compute_dtype=jnp.bfloat16, out_dtype=jnp.bfloat16):
    """y = act(x @ w1) @ w2.

    x: (..., d_model); w1/w2 ideally come from prepare_ffn_weights() (bf16, lane-padded).
    block_m guidance: ~768-1024 on v6e (128 MiB VMEM), ~384-512 on v7x (64 MiB),
    ~256 on v5e; the VMEM-budget auto-fit below shrinks it further if needed.
    """
    if non_linearity not in ("relu", "gelu", "leaky"):
        raise ValueError(f"unknown non_linearity: {non_linearity}")

    d_model = x.shape[-1]
    # Accept raw weights too, but then we pay the per-call cast/pad HBM pass.
    if w1.dtype != compute_dtype or (w1.shape[0] % _LANE) or (w1.shape[1] % _LANE):
        w1, w2 = prepare_ffn_weights(w1, w2, compute_dtype=compute_dtype)
    D, F = w1.shape
    assert w2.shape == (F, D) and D >= d_model

    lead_shape = x.shape[:-1]
    x2d = x.reshape(-1, d_model)
    M = x2d.shape[0]

    cbytes = jnp.dtype(compute_dtype).itemsize
    obytes = jnp.dtype(out_dtype).itemsize
    budget = _vmem_budget_bytes()

    # d_ff tile: costs only VMEM (AI w.r.t. weights depends on tm, not tf).
    tf = _pick_tf(F, block_f)
    # Row tile: as large as the budget allows, MXU (256) / bf16-sublane (16) aligned.
    tm = block_m if M >= block_m else _round_up(M, _SUBLANE_BF16)
    if tm >= 256:
        tm = (tm // 256) * 256
    while tm > _SUBLANE_BF16 and _tile_vmem_bytes(tm, tf, D, cbytes, obytes) > budget:
        tm = max(_SUBLANE_BF16, (tm // 2 // _SUBLANE_BF16) * _SUBLANE_BF16)

    M_pad = _round_up(M, tm)

    # Per-call input prep: pad rows to the row tile and d_model to the weights'
    # padded D (no-ops for aligned shapes), cast to the MXU dtype.
    pad_m, pad_d = M_pad - M, D - d_model
    if pad_m or pad_d:
        x2d = jnp.pad(x2d, ((0, pad_m), (0, pad_d)))
    x2d = x2d.astype(compute_dtype)

    grid = (M_pad // tm, F // tf)
    n_row_tiles = grid[0]

    cost = pl.CostEstimate(
        flops=4 * M_pad * D * F,                              # two matmuls, 2*M*D*F each
        transcendentals=(M_pad * F) if non_linearity == "gelu" else 0,
        bytes_accessed=(M_pad * D * cbytes                    # x read
                        + n_row_tiles * 2 * D * F * cbytes    # W1 + W2, re-read per row tile
                        + M_pad * D * obytes),                # output write
    )

    vmem_limit = min(budget + (8 << 20),
                     max(32 << 20,
                         _tile_vmem_bytes(tm, tf, D, cbytes, obytes) + (4 << 20)))

    kernel = functools.partial(ffn_kernel, non_linearity=non_linearity)

    out = pl.pallas_call(
        kernel,
        out_shape=jax.ShapeDtypeStruct((M_pad, D), out_dtype),
        grid_spec=pltpu.PrefetchScalarGridSpec(
            num_scalar_prefetch=0,
            grid=grid,
            in_specs=[
                pl.BlockSpec((tm, D), lambda i, f: (i, 0)),   # x row tile (resident over f)
                pl.BlockSpec((D, tf), lambda i, f: (0, f)),   # W1 column tile
                pl.BlockSpec((tf, D), lambda i, f: (f, 0)),   # W2 row tile
            ],
            out_specs=pl.BlockSpec((tm, D), lambda i, f: (i, 0)),
            scratch_shapes=[pltpu.VMEM((tm, D), jnp.float32)],
        ),
        compiler_params=pltpu.CompilerParams(
            # NOTE(v7x megacore): the i axis shards across both TensorCores; each
            # core streams the same W1/W2 tiles, halving per-chip weight AI —
            # prefer grid[0] >= 2 and a large tm when M allows.
            dimension_semantics=("parallel", "arbitrary"),
            vmem_limit_bytes=int(vmem_limit),
        ),
        cost_estimate=cost,
    )(x2d, w1, w2)

    out = out[:M, :d_model]
    return out.reshape(lead_shape + (d_model,))


# ---------------------------------------------------------------------------
# Demo / smoke test
# ---------------------------------------------------------------------------
if __name__ == "__main__":
    B, S, d_model, multiplier = 2, 8, 128, 4           # d_model lane-aligned (128)
    d_ff = multiplier * d_model                         # 512

    key = jax.random.PRNGKey(0)
    kx, k1, k2 = jax.random.split(key, 3)
    x = jax.random.normal(kx, (B, S, d_model), jnp.float32)
    w1 = (1.0 / (d_model ** 0.5)) * jax.random.normal(k1, (d_model, d_ff), jnp.float32)
    w2 = (1.0 / (d_ff ** 0.5)) * jax.random.normal(k2, (d_ff, d_model), jnp.float32)

    # One-time weight prep (cast/pad) — kept out of the per-call path.
    w1p, w2p = prepare_ffn_weights(w1, w2)

    # block_f=256 -> two d_ff reduction steps, exercising the accumulator + fused-store path.
    y = ffn_forward(x, w1p, w2p, non_linearity="relu", block_f=256)
    y = jax.block_until_ready(y)

    ref = jnp.maximum(x @ w1, 0.0) @ w2
    assert y.shape == (B, S, d_model)
    assert bool(jnp.all(jnp.isfinite(y)))
    # bf16 operands / bf16 output with f32 accumulation -> relaxed tolerance vs f32 ref.
    yf = y.astype(jnp.float32)
    assert bool(jnp.allclose(yf, ref, rtol=5e-2, atol=5e-2)), float(jnp.max(jnp.abs(yf - ref)))
    print("KERNEL_OK")
</pallas_src>

<mosaic_0001>
module attributes {stable_mosaic.version = 11 : i64} {
  func.func @ffn_kernel(%arg0: i32, %arg1: i32, %arg2: memref<16x128xbf16, #tpu.memory_space<vmem>>, %arg3: memref<128x256xbf16, #tpu.memory_space<vmem>>, %arg4: memref<256x128xbf16, #tpu.memory_space<vmem>>, %arg5: memref<16x128xbf16, #tpu.memory_space<vmem>>, %arg6: memref<16x128xf32, #tpu.memory_space<vmem>>) attributes {dimension_semantics = [#tpu.dimension_semantics<parallel>, #tpu.dimension_semantics<arbitrary>], iteration_bounds = array<i64: 1, 2>, scalar_prefetch = 0 : i64, scratch_operands = 1 : i64, tpu.core_type = #tpu.core_type<tc>, window_params = [{transform_indices = @transform_0, window_bounds = array<i64: 16, 128>}, {transform_indices = @transform_1, window_bounds = array<i64: 128, 256>}, {transform_indices = @transform_2, window_bounds = array<i64: 256, 128>}, {transform_indices = @transform_3, window_bounds = array<i64: 16, 128>}]} {
    %c0_i32 = arith.constant 0 : i32
    %0 = arith.cmpi eq, %arg1, %c0_i32 : i32
    %1 = arith.extui %0 : i1 to i32
    %c0_i32_0 = arith.constant 0 : i32
    %2 = arith.cmpi ne, %1, %c0_i32_0 : i32
    scf.if %2 {
      %cst_10 = arith.constant 0.000000e+00 : f32
      %17 = vector.broadcast %cst_10 : f32 to vector<16x128xf32>
      %c0_11 = arith.constant 0 : index
      %c0_12 = arith.constant 0 : index
      %18 = vector.load %arg6[%c0_11, %c0_12] : memref<16x128xf32, #tpu.memory_space<vmem>>, vector<16x128xf32>
      tpu.vector_store %arg6[%c0_11, %c0_12], %17 {strides = array<i32>} : memref<16x128xf32, #tpu.memory_space<vmem>>, vector<16x128xf32>,
    } else {
    }
    %c0 = arith.constant 0 : index
    %c0_1 = arith.constant 0 : index
    %3 = vector.load %arg2[%c0, %c0_1] : memref<16x128xbf16, #tpu.memory_space<vmem>>, vector<16x128xbf16>
    %c0_2 = arith.constant 0 : index
    %c0_3 = arith.constant 0 : index
    %4 = vector.load %arg3[%c0_2, %c0_3] : memref<128x256xbf16, #tpu.memory_space<vmem>>, vector<128x256xbf16>
    %cst = arith.constant dense<0.000000e+00> : vector<16x256xf32>
    %5 = tpu.matmul %3, %4, %cst {dimension_numbers = #tpu.dot_dimension_numbers<[1], [0], [0], [1], [0, 0, 1, 1], [], []>} : vector<16x128xbf16>, vector<128x256xbf16>, vector<16x256xf32> -> vector<16x256xf32>
    %cst_4 = arith.constant 0.000000e+00 : f32
    %6 = vector.broadcast %cst_4 : f32 to vector<16x256xf32>
    %7 = arith.maximumf %5, %6 : vector<16x256xf32>
    %8 = arith.truncf %7 : vector<16x256xf32> to vector<16x256xbf16>
    %c0_5 = arith.constant 0 : index
    %c0_6 = arith.constant 0 : index
    %9 = vector.load %arg4[%c0_5, %c0_6] : memref<256x128xbf16, #tpu.memory_space<vmem>>, vector<256x128xbf16>
    %cst_7 = arith.constant dense<0.000000e+00> : vector<16x128xf32>
    %10 = tpu.matmul %8, %9, %cst_7 {dimension_numbers = #tpu.dot_dimension_numbers<[1], [0], [0], [1], [0, 0, 1, 1], [], []>} : vector<16x256xbf16>, vector<256x128xbf16>, vector<16x128xf32> -> vector<16x128xf32>
    %c1_i32 = arith.constant 1 : i32
    %11 = arith.cmpi eq, %arg1, %c1_i32 : i32
    %true = arith.constant true
    %12 = arith.xori %11, %true : i1
    %13 = arith.extui %12 : i1 to i32
    %c0_i32_8 = arith.constant 0 : i32
    %14 = arith.cmpi ne, %13, %c0_i32_8 : i32
    scf.if %14 {
      %c0_10 = arith.constant 0 : index
      %c0_11 = arith.constant 0 : index
      %17 = vector.load %arg6[%c0_10, %c0_11] : memref<16x128xf32, #tpu.memory_space<vmem>>, vector<16x128xf32>
      %18 = arith.addf %17, %10 : vector<16x128xf32>
      %c0_12 = arith.constant 0 : index
      %c0_13 = arith.constant 0 : index
      %19 = vector.load %arg6[%c0_12, %c0_13] : memref<16x128xf32, #tpu.memory_space<vmem>>, vector<16x128xf32>
      tpu.vector_store %arg6[%c0_12, %c0_13], %18 {strides = array<i32>} : memref<16x128xf32, #tpu.memory_space<vmem>>, vector<16x128xf32>,
    } else {
    }
    %15 = arith.extui %11 : i1 to i32
    %c0_i32_9 = arith.constant 0 : i32
    %16 = arith.cmpi ne, %15, %c0_i32_9 : i32
    scf.if %16 {
      %c0_10 = arith.constant 0 : index
      %c0_11 = arith.constant 0 : index
      %17 = vector.load %arg6[%c0_10, %c0_11] : memref<16x128xf32, #tpu.memory_space<vmem>>, vector<16x128xf32>
      %18 = arith.addf %17, %10 : vector<16x128xf32>
      %19 = arith.truncf %18 : vector<16x128xf32> to vector<16x128xbf16>
      %c0_12 = arith.constant 0 : index
      %c0_13 = arith.constant 0 : index
      %20 = vector.load %arg5[%c0_12, %c0_13] : memref<16x128xbf16, #tpu.memory_space<vmem>>, vector<16x128xbf16>
      tpu.vector_store %arg5[%c0_12, %c0_13], %19 {strides = array<i32>} : memref<16x128xbf16, #tpu.memory_space<vmem>>, vector<16x128xbf16>,
    } else {
    }
    return
  }
  func.func @transform_0(%arg0: i32, %arg1: i32) -> (i32, i32) {
    %c0_i32 = arith.constant 0 : i32
    %c0_i32_0 = arith.constant 0 : i32
    return %arg0, %c0_i32 : i32, i32
  }
  func.func @transform_1(%arg0: i32, %arg1: i32) -> (i32, i32) {
    %c0_i32 = arith.constant 0 : i32
    %c0_i32_0 = arith.constant 0 : i32
    return %c0_i32, %arg1 : i32, i32
  }
  func.func @transform_2(%arg0: i32, %arg1: i32) -> (i32, i32) {
    %c0_i32 = arith.constant 0 : i32
    %c0_i32_0 = arith.constant 0 : i32
    return %arg1, %c0_i32 : i32, i32
  }
  func.func @transform_3(%arg0: i32, %arg1: i32) -> (i32, i32) {
    %c0_i32 = arith.constant 0 : i32
    %c0_i32_0 = arith.constant 0 : i32
    return %arg0, %c0_i32 : i32, i32
  }
}

</mosaic_0001>

<bundles_post_ra>
// kernel: tpu_custom_call.1
= control target key start
LH: loop header
LB: loop body
LE: loop exit
PB: predicated region body
PF: predicated region fallthrough
CT: control target
= control target key end

     0   :  { %8 = vsyncpa [#allocation4], 0  ;;  %s1373_s0 = inlined_call_operand.hbm [shape: bf16[16,128], index: 0, kind: input, shape index: {}]   ;;  %s1374_s1 = inlined_call_operand.hbm [shape: bf16[128,512], index: 1, kind: input, shape index: {}]   ;;  %s1375_s2 = inlined_call_operand.hbm [shape: bf16[512,128], index: 2, kind: input, shape index: {}]   ;;  %s1376_s3 = inlined_call_operand.hbm [shape: bf16[16,128], index: 3, kind: output, shape index: {}]  }
   0x1   :  { %9 = vsyncpa [#allocation7], 0 }
   0x2   :  { %11 = vsyncpa [#allocation7 + $0x1], 0 }
   0x3   :  { %12 = vsyncpa [#allocation5], 0  ;;  %s1182_s12 = smov 0   ;;  %s1184_s13 = smov 0  }
   0x4   :  { %s1186_s14 = smov 0   ;;  %s1188_s15 = smov 0  }
   0x5   :  { %s1190_s16 = smov 0   ;;  %s1192_s17 = smov 0  }
   0x6 LB: > { %s27_s18 = sadd.s32 1, %s1146_s16  ;;  %s63_s19 = sadd.s32 1, %s1138_s14  ;;  %s1150_s17 = sphi %s1192_s17, %s18_s17   ;;  %s1146_s16 = sphi %s1190_s16, %s1385_s16   ;;  %s1142_s15 = sphi %s1188_s15, %s1384_s15   ;;  %s1138_s14 = sphi %s1186_s14, %s1383_s14   ;;  %s1134_s13 = sphi %s1184_s13, %s1382_s13   ;;  %s1130_s12 = sphi %s1182_s12, %s1381_s12  }
   0x7   : > { %p28_p0 = scmp.ge.s32.totalorder %s27_s18, 2  ;;  %p70_p1 = scmp.ne.s32.totalorder %s1138_s14, %s1134_s13 }
   0x8   : > { %p71_p2 = scmp.eq.s32.totalorder %s1150_s17, 0  ;;  %p912_p4 = scmp.lt.s32.totalorder %s1150_s17, 2 }
   0x9   : > { %s1387_s18 = smov (%p28_p0, %s27_s18), 0  ;;  %s169_s22 = sand.u32 1, %s1150_s17  }
   0xa   : > { %p1219_p3 = por %p71_p2, %p70_p1  ;;  %s60_s21 = ssub.s32 %s1146_s16, %s1387_s18 }
   0xb   : > { %p61_p5 = scmp.eq.s32.totalorder %s60_s21, 0  ;;  %s171_s23 = sand.u32 1, %s1138_s14  }
   0xc   : > { %s848_s24 = sshll.u32 %s1146_s16, 3  ;;  %s1232_s26 = sshll.u32 %s171_s23, 7 }
   0xd   : > { %s1230_s25 = scalar_select %p61_p5, %s1138_s14, %s63_s19  }
   0xe   : > { %s178_s29 = scalar_lea.hbm %s1374_s1, %s848_s24  ;;  %s173_s4 = scalar_lea.vmem [#allocation6], %s1232_s26 }
   0xf   : > { %s179_s30 = sshll.u32 %s178_s29, 4  ;;  %s181_s5 = sshll.u32 %s173_s4, 4  ;;  %s180_s30 = int_to_ptr.hbm [resolvable:$true] %s179_s30  ;;  %s182_s5 = int_to_ptr.vmem [resolvable:$true] %s181_s5 }
  0x10   : > { %p1242_p6 = pnand %p912_p4, %p1219_p3  ;;  %s1246_s7 = scalar_lea.sflag [#allocation7], %s169_s22 }
  0x11   : > { %s1152_s8 = smov 256   ;;  %s1153_s9 = smov 128  }
  0x12   : > { %s1154_s10 = smov 8   ;;  %s1252_s11 = sadd.s32 4294967295, %s1150_s17  }
  0x13   : > { %907 = dma.hbm_to_vmem [thread:$0]  (!%p1242_p6), %s180_s30, 2048, %s182_s5, %s1246_s7, %s1152_s8, %s1153_s9, %s1154_s10  }
  0x14   : > { %p76_p7 = scmp.ne.s32.totalorder %s1134_s13, %s1130_s12  ;;  %p77_p8 = scmp.eq.s32.totalorder %s1252_s11, 0 }
  0x15   : > { %p696_p9 = scmp.ge.s32.totalorder %s1150_s17, 1  ;;  %p139_p10 = scmp.lt.s32.totalorder %s1150_s17, 3 }
  0x16   : > { %p1261_p11 = por %p77_p8, %p76_p7  ;;  %s153_s22 = sshll.u32 %s1373_s0, 4  ;;  %s154_s22 = int_to_ptr.hbm [resolvable:$true] %s153_s22 }
  0x17   : > { %p1268_p12 = pnand %p696_p9, %p139_p10  ;;  %s1155_s12 = smov [#allocation3]  }
  0x18   : > { %s155_s24 = sshll.u32 %s1155_s12, 4  ;;  %s849_s27 = sshll.u32 %s1146_s16, 7  ;;  %s156_s24 = int_to_ptr.vmem [resolvable:$true] %s155_s24 }
  0x19   : > { %p900_p13 = pneg %p1268_p12  ;;  %s195_s28 = scalar_lea.vmem [#allocation8], %s1232_s26 }
  0x1a   : > { %s203_s29 = sshll.u32 %s195_s28, 4  ;;  %s200_s5 = scalar_lea.hbm %s1375_s2, %s849_s27  ;;  %s204_s29 = int_to_ptr.vmem [resolvable:$true] %s203_s29 }
  0x1b   : > { %p901_p0 = pnand %p900_p13, %p77_p8  ;;  %s1156_s8 = smov 64  }
  0x1c   : > { %s1157_s9 = smov 4   ;;  %s201_s10 = sshll.u32 %s200_s5, 4  ;;  %s202_s10 = int_to_ptr.hbm [resolvable:$true] %s201_s10 }
  0x1d   : > { %903 = dma.hbm_to_vmem [thread:$0]  (!%p901_p0), %s154_s22, 128, %s156_s24, [#allocation4], %s1156_s8, %s1156_s8, %s1157_s9  }
  0x1e   : > { %910 = dma.hbm_to_vmem [thread:$0]  (!%p1242_p6), %s202_s10, 2048, %s204_s29, %s1246_s7, %s1156_s8, %s1156_s8, %s1157_s9  }
  0x1f   : > { %215 = sbr.rel (%p1268_p12) target bundleno = 389 (0x185), region = 32 }
  0x24   : > { %1117 = dma.done.wait (%p77_p8), [#allocation4], 128  }
  0x25   : > { %1119 = vsyncadd (%p77_p8), [#allocation4], 4294967168  ;;  %s222_s26 = sand.u32 1, %s1252_s11   ;;  %s224_s20 = sand.u32 1, %s1134_s13  }
  0x26   : > { %s707_s21 = sshll.u32 %s224_s20, 7  ;;  %s223_s22 = scalar_lea.sflag [#allocation7], %s222_s26 }
  0x27   : > { %s1292_s12 = scalar_lea.vmem [#allocation6], %s707_s21 }
  0x28   : > { %1121 = dma.done.wait (%p1261_p11), %s223_s22, 4096  }
  0x29   : > { %1123 = vsyncadd (%p1261_p11), %s223_s22, 4294963200  ;;  %s1298_s6 = scalar_lea.vmem [#allocation8], %s707_s21  ;;  %p709_p1 = scmp.ne.s32.totalorder %s1142_s15, 0 }
  0x2b   : > { %267 = sbr.rel (%p709_p1) target bundleno = 51 (0x33), region = 48 }
  0x30   : > { %v1158_v0 = vmov 0.0  }
  0x31   : > { %268 = vst [vmem:[#allocation2] sm:$0xff] %v1158_v0 }
  0x32   : > { %269 = vst [vmem:[#allocation2 + $0x8] sm:$0xff] %v1158_v0 }
  0x33 PF: > { %v772_v1 = vld [vmem:[%s1292_s12 + $0x70] sm:$0xf]  ;;  %v866_v2 = vld [vmem:[%s1292_s12 + $0x74] sm:$0xf0]  ;;  %v865_v3 = vld [vmem:[%s1292_s12 + $0x74] sm:$0xf] }
  0x34   : > { %v773_v4 = vor.u32 %v866_v2, %v772_v1  ;;  %v774_v5 = vld [vmem:[%s1292_s12 + $0x78] sm:$0xf0]  ;;  %v764_v6 = vld [vmem:[%s1292_s12 + $0x60] sm:$0xf]  ;;  %v864_v7 = vld [vmem:[%s1292_s12 + $0x64] sm:$0xf0] }
  0x35   : > { %v777_v8 = vor.u32 %v865_v3, %v774_v5  ;;  %v863_v9 = vld [vmem:[%s1292_s12 + $0x64] sm:$0xf]  ;;  %v766_v10 = vld [vmem:[%s1292_s12 + $0x68] sm:$0xf0]  ;;  %v765_v11 = vor.u32 %v864_v7, %v764_v6  ;;  %v756_v13 = vld [vmem:[%s1292_s12 + $0x50] sm:$0xf] }
  0x36   : > { %374 = vmatpush.bf16.msra.mxu0 %v773_v4  ;;  %v769_v12 = vor.u32 %v863_v9, %v766_v10  ;;  %v862_v14 = vld [vmem:[%s1292_s12 + $0x54] sm:$0xf0]  ;;  %v861_v15 = vld [vmem:[%s1292_s12 + $0x54] sm:$0xf]  ;;  %v758_v16 = vld [vmem:[%s1292_s12 + $0x58] sm:$0xf0] }
  0x37   : > { %388 = vmatpush.bf16.msra.mxu1 %v777_v8  ;;  %v757_v17 = vor.u32 %v862_v14, %v756_v13  ;;  %v761_v18 = vor.u32 %v861_v15, %v758_v16  ;;  %v748_v19 = vld [vmem:[%s1292_s12 + $0x40] sm:$0xf]  ;;  %v860_v20 = vld [vmem:[%s1292_s12 + $0x44] sm:$0xf0]  ;;  %v859_v21 = vld [vmem:[%s1292_s12 + $0x44] sm:$0xf] }
  0x38   : > { %v750_v22 = vld [vmem:[%s1292_s12 + $0x48] sm:$0xf0]  ;;  %v749_v23 = vor.u32 %v860_v20, %v748_v19  ;;  %v874_v24 = vld [vmem:[%s1298_s6 + $0x38] sm:$0xff]  ;;  %v740_v27 = vld [vmem:[%s1292_s12 + $0x30] sm:$0xf]  ;;  %p842_p2 = scmp.eq.s32.totalorder %s1142_s15, 1 }
  0x39   : > { %v882_v25 = vld [vmem:[%s1298_s6 + $0x78] sm:$0xff]  ;;  %v753_v26 = vor.u32 %v859_v21, %v750_v22  ;;  %v857_v29 = vld [vmem:[%s1292_s12 + $0x34] sm:$0xf]  ;;  %536 = vmatpush.bf16.msra.mxu2 %v874_v24  ;;  %v732_v35 = vld [vmem:[%s1292_s12 + $0x20] sm:$0xf] }
  0x3a   : > { %375 = vmatpush.bf16.msra.mxu0 %v765_v11  ;;  %v858_v28 = vld [vmem:[%s1292_s12 + $0x34] sm:$0xf0]  ;;  %v742_v30 = vld [vmem:[%s1292_s12 + $0x38] sm:$0xf0]  ;;  %550 = vmatpush.bf16.msra.mxu3 %v882_v25  ;;  %v873_v31 = vld [vmem:[%s1298_s6 + $0x30] sm:$0xff] }
  0x3b   : > { %389 = vmatpush.bf16.msra.mxu1 %v769_v12  ;;  %v881_v32 = vld [vmem:[%s1298_s6 + $0x70] sm:$0xff]  ;;  %v741_v33 = vor.u32 %v858_v28, %v740_v27  ;;  %v745_v34 = vor.u32 %v857_v29, %v742_v30  ;;  %v856_v36 = vld [vmem:[%s1292_s12 + $0x24] sm:$0xf0]  ;;  %v855_v37 = vld [vmem:[%s1292_s12 + $0x24] sm:$0xf] }
  0x3c   : > { %v734_v38 = vld [vmem:[%s1292_s12 + $0x28] sm:$0xf0]  ;;  %v733_v41 = vor.u32 %v856_v36, %v732_v35  ;;  %v724_v43 = vld [vmem:[%s1292_s12 + $0x10] sm:$0xf]  ;;  %v854_v44 = vld [vmem:[%s1292_s12 + $0x14] sm:$0xf0] }
  0x3d   : > { %537 = vmatpush.bf16.msra.mxu2 %v873_v31  ;;  %v872_v39 = vld [vmem:[%s1298_s6 + $0x28] sm:$0xff]  ;;  %v737_v42 = vor.u32 %v855_v37, %v734_v38  ;;  %v853_v45 = vld [vmem:[%s1292_s12 + $0x14] sm:$0xf]  ;;  %v726_v46 = vld [vmem:[%s1292_s12 + $0x18] sm:$0xf0]  ;;  %v725_v49 = vor.u32 %v854_v44, %v724_v43 }
  0x3e   : > { %376 = vmatpush.bf16.msra.mxu0 %v757_v17  ;;  %551 = vmatpush.bf16.msra.mxu3 %v881_v32  ;;  %v880_v40 = vld [vmem:[%s1298_s6 + $0x68] sm:$0xff]  ;;  %v871_v47 = vld [vmem:[%s1298_s6 + $0x20] sm:$0xff]  ;;  %v729_v50 = vor.u32 %v853_v45, %v726_v46  ;;  %v870_v55 = vld [vmem:[%s1298_s6 + $0x18] sm:$0xff] }
  0x3f   : > { %390 = vmatpush.bf16.msra.mxu1 %v761_v18  ;;  %v879_v48 = vld [vmem:[%s1298_s6 + $0x60] sm:$0xff]  ;;  %v852_v52 = vld [vmem:[%s1292_s12 + $0x4] sm:$0xf0]  ;;  %v718_v54 = vld [vmem:[%s1292_s12 + $0x8] sm:$0xf0] }
  0x40   : > { %v716_v51 = vld [vmem:[%s1292_s12] sm:$0xf]  ;;  %v851_v53 = vld [vmem:[%s1292_s12 + $0x4] sm:$0xf]  ;;  %v878_v56 = vld [vmem:[%s1298_s6 + $0x58] sm:$0xff] }
  0x41   : > { %538 = vmatpush.bf16.msra.mxu2 %v872_v39  ;;  %v717_v57 = vor.u32 %v852_v52, %v716_v51  ;;  %v721_v58 = vor.u32 %v851_v53, %v718_v54  ;;  %v850_v59 = vld [vmem:[#allocation3] sm:$0xff]  ;;  %v869_v60 = vld [vmem:[%s1298_s6 + $0x10] sm:$0xff]  ;;  %v868_v62 = vld [vmem:[%s1298_s6 + $0x8] sm:$0xff] }
  0x42   : > { %377 = vmatpush.bf16.msra.mxu0 %v749_v23  ;;  %552 = vmatpush.bf16.msra.mxu3 %v880_v40  ;;  %v877_v61 = vld [vmem:[%s1298_s6 + $0x50] sm:$0xff]  ;;  %v876_v63 = vld [vmem:[%s1298_s6 + $0x48] sm:$0xff]  ;;  %v867_v0 = vld [vmem:[%s1298_s6] sm:$0xff] }
  0x43   : > { %391 = vmatpush.bf16.msra.mxu1 %v753_v26  ;;  %v875_v1 = vld [vmem:[%s1298_s6 + $0x40] sm:$0xff] }
  0x45   : > { %539 = vmatpush.bf16.msra.mxu2 %v871_v47 }
  0x46   : > { %378 = vmatpush.bf16.msra.mxu0 %v741_v33  ;;  %553 = vmatpush.bf16.msra.mxu3 %v879_v48 }
  0x47   : > { %392 = vmatpush.bf16.msra.mxu1 %v745_v34 }
  0x49   : > { %540 = vmatpush.bf16.msra.mxu2 %v870_v55 }
  0x4a   : > { %379 = vmatpush.bf16.msra.mxu0 %v733_v41  ;;  %554 = vmatpush.bf16.msra.mxu3 %v878_v56 }
  0x4b   : > { %393 = vmatpush.bf16.msra.mxu1 %v737_v42 }
  0x4d   : > { %541 = vmatpush.bf16.msra.mxu2 %v869_v60 }
  0x4e   : > { %380 = vmatpush.bf16.msra.mxu0 %v725_v49  ;;  %555 = vmatpush.bf16.msra.mxu3 %v877_v61 }
  0x4f   : > { %394 = vmatpush.bf16.msra.mxu1 %v729_v50 }
  0x51   : > { %542 = vmatpush.bf16.msra.mxu2 %v868_v62 }
  0x52   : > { %381 = vmatpush.bf16.msra.mxu0 %v717_v57  ;;  %556 = vmatpush.bf16.msra.mxu3 %v876_v63 }
  0x53   : > { %395 = vmatpush.bf16.msra.mxu1 %v721_v58 }
  0x55   : > { %382 = vmatmul.bf16.vlgmr.msra.gmra.mxu0 %v850_v59  ;;  %543 = vmatpush.bf16.msra.mxu2 %v867_v0 }
  0x56   : > { %396 = vmatmul.bf16.vlgmr.msra.gmra.mxu1 %v850_v59  ;;  %557 = vmatpush.bf16.msra.mxu3 %v875_v1 }
  0xd2   : > { %v383_v2 = vpop.f32.mrf.mxu0 }
  0xd3   : > { %v397_v3 = vpop.f32.mrf.mxu1  ;;  %v402_v5 = vmax.f32 %v383_v2, 0.0 }
  0xd4   : > { %v403_v8 = vmax.f32 %v397_v3, 0.0 }
  0xda   : > { %v385_v4 = vpop.f32.mrf.mxu0 }
  0xdb   : > { %v404_v6 = vmax.f32 %v385_v4, 0.0  ;;  %v399_v7 = vpop.f32.mrf.mxu1 }
  0xdc   : > { %v405_v9 = vmax.f32 %v399_v7, 0.0 }
  0xdd   : > { %v406_v10 = vpack.c.bf16 %v404_v6, %v402_v5 }
  0xde   : > { %v407_v11 = vpack.c.bf16 %v405_v9, %v403_v8 }
  0xdf   : > { %544 = vmatmul.bf16.vlgmr.msra.gmra.mxu2 %v406_v10 }
  0xe0   : > { %558 = vmatmul.bf16.vlgmr.msra.gmra.mxu3 %v407_v11 }
 0x162   : > { %v545_v12 = vpop.f32.mrf.mxu2 }
 0x163   : > { %v559_v13 = vpop.f32.mrf.mxu3 }
 0x164   : > { %v560_v14 = vadd.f32 %v559_v13, %v545_v12 }
 0x168   : > { %568 = sbr.rel (%p842_p2) target bundleno = 370 (0x172), region = 52 }
 0x16a   : > { %v547_v15 = vpop.f32.mrf.mxu2 }
 0x16b   : > { %v561_v16 = vpop.f32.mrf.mxu3 }
 0x16c   : > { %v562_v17 = vadd.f32 %v561_v16, %v547_v15 }
 0x16d   : > { %v569_v18 = vld [vmem:[#allocation2] sm:$0xff]  ;;  %v570_v19 = vld [vmem:[#allocation2 + $0x8] sm:$0xff] }
 0x16e   : > { %v571_v20 = vadd.f32 %v569_v18, %v560_v14  ;;  %v572_v21 = vadd.f32 %v570_v19, %v562_v17 }
 0x170   : > { %573 = vst [vmem:[#allocation2] sm:$0xff] %v571_v20 }
 0x171   : > { %574 = vst [vmem:[#allocation2 + $0x8] sm:$0xff] %v572_v21 }
 0x172 PF: > { %p843_p3 = scmp.ne.s32.totalorder %s1142_s15, 1 }
 0x174   : > { %577 = sbr.rel (%p843_p3) target bundleno = 383 (0x17f), region = 56 }
 0x179   : > { %v578_v22 = vld [vmem:[#allocation2] sm:$0xff]  ;;  %v579_v23 = vld [vmem:[#allocation2 + $0x8] sm:$0xff] }
 0x17a   : > { %v580_v24 = vadd.f32 %v578_v22, %v560_v14  ;;  %v581_v25 = vadd.f32 %v579_v23, %v562_v17 }
 0x17c   : > { %v886_v26 = vpack.c.bf16 %v581_v25, %v580_v24 }
 0x17e   : > { %887 = vst [vmem:[#allocation9] sm:$0xff] %v886_v26  }
 0x17f PF: > { %p914_p4 = scmp.eq.s32.totalorder %s1252_s11, 1  ;;  %s596_s23 = sshll.u32 %s1376_s3, 4  ;;  %s597_s23 = int_to_ptr.hbm [resolvable:$true] %s596_s23 }
 0x180   : > { %s1159_s24 = smov [#allocation9]   ;;  %s1160_s28 = smov 64  }
 0x181   : > { %s594_s27 = sshll.u32 %s1159_s24, 4  ;;  %s1161_s15 = smov 4   ;;  %s595_s27 = int_to_ptr.vmem [resolvable:$true] %s594_s27 }
 0x182   : > { %897 = dma.vmem_to_hbm [thread:$0]  (%p914_p4), %s595_s27, 128, %s597_s23, [#allocation5], %s1160_s28, %s1160_s28, %s1161_s15  }
 0x183   : > { %1125 = dma.done.wait (%p914_p4), [#allocation5], 128  }
 0x184   : > { %1127 = vsyncadd (%p914_p4), [#allocation5], 4294967168 }
 0x185 PF: > { %s18_s17 = sadd.s32 1, %s1150_s17   ;;  %s1381_s12 = smov %s1134_s13 }
 0x186   : > { %p15_p5 = scmp.ge.s32.totalorder %s18_s17, 4   ;;  %s1382_s13 = smov %s1138_s14 }
 0x187   : > { %s1383_s14 = smov %s1230_s25  ;;  %s1384_s15 = smov %s1146_s16 }
 0x188   : > { %s1385_s16 = smov %s1387_s18  ;;  %17 = sbr.rel (!%p15_p5) target bundleno = 6 (0x6), region = 99 }
 0x18d   :  { %613 = vsyncpa [#allocation4], 1 }
 0x18e   :  { %615 = vsyncpa [#allocation4 + $0x1], 1 }
 0x18f   :  { %616 = vsyncpa [#allocation7], 1 }
 0x190   :  { %618 = vsyncpa [#allocation7 + $0x1], 1 }
 0x191   :  { %619 = vsyncpa [#allocation5], 1 }
 0x192   :  { %621 = vsyncpa [#allocation5 + $0x1], 1 }

</bundles_post_ra>
